<compile_context>
chip_gen: v7x
topology: tpu7x:2x2x1
jax: 0.10.0
libtpu: 0.0.40
codegen_flags: <defaults>
</compile_context>

<pallas_src>
import jax
import jax.numpy as jnp
import numpy as np
from jax.experimental import pallas as pl
from jax.experimental.pallas import tpu as pltpu


def _selector_kernel(mask_ref, feat_ref, out_ref):
    """One (hw-split, C-block) grid step.

    mask_ref: VMEM (P, HW_BLK) f32  -- precomputed, scaled by 1/(C*count_p)
    feat_ref: VMEM (N, C_BLK, HW_BLK) feature dtype
    out_ref : VMEM (N, P) f32       -- resident accumulator across the C axis
    """
    c_idx = pl.program_id(1)

    @pl.when(c_idx == 0)
    def _():
        out_ref[...] = jnp.zeros_like(out_ref)

    # Channel reduction for this C-block (paid once per block, f32 accumulate
    # so bf16 features keep full precision).
    s = jnp.sum(feat_ref[...].astype(jnp.float32), axis=1)          # (N, HW_BLK)

    # All P crop-means at once on the MXU, contracting the lane (HW) dim.
    partial = jax.lax.dot_general(
        s, mask_ref[...],
        dimension_numbers=(((1,), (1,)), ((), ())),
        preferred_element_type=jnp.float32)                          # (N, P)

    out_ref[...] += partial


def _choose_hw_split(hw):
    # Two parallel HW halves feed both TensorCores on v7x ("parallel" axis);
    # only legal when each half stays 128-lane aligned. Free on v5e/v6e.
    return 2 if hw % 256 == 0 else 1


def _choose_c_block(n, c, hw_blk, itemsize, per_buffer_budget):
    """Largest C tile whose (N, C_BLK, HW_BLK) feature block fits the
    per-buffer budget (double-buffering handled by the caller).  C_BLK must
    divide C and be a multiple of the dtype sublane tile, or equal C."""
    sublane = max(8, 32 // itemsize)      # 8 for f32, 16 for bf16, 32 for int8

    def blk_bytes(blk):
        return n * blk * hw_blk * itemsize

    if c % sublane != 0 or blk_bytes(c) <= per_buffer_budget:
        return c
    cands = [blk for blk in range(sublane, c, sublane)
             if c % blk == 0 and blk_bytes(blk) <= per_buffer_budget]
    return max(cands) if cands else sublane


def selector_forward(feature, bbox, scale_ratio):
    """feature: (N, C, H, W), bbox: (P, 4) f32 [x1,y1,x2,y2], scale_ratio: (2,) f32.

    Returns (P*N, 1, 1, 1) f32, matching torch.cat(scores)."""
    N, C, H, W = feature.shape
    P = bbox.shape[0]
    HW = H * W

    # ---- grid-invariant precompute (hoisted out of the kernel, plain JAX) ----
    # Integer box coords (floor-div by scale), same as the torch code.
    x1 = jnp.floor_divide(bbox[:, 0], scale_ratio[1]).astype(jnp.int32)   # (P,)
    y1 = jnp.floor_divide(bbox[:, 1], scale_ratio[0]).astype(jnp.int32)
    x2 = jnp.floor_divide(bbox[:, 2], scale_ratio[1]).astype(jnp.int32)
    y2 = jnp.floor_divide(bbox[:, 3], scale_ratio[0]).astype(jnp.int32)

    flat = jnp.arange(HW, dtype=jnp.int32)
    rows = (flat // W)[None, :]                                           # (1, HW)
    cols = (flat % W)[None, :]
    inside = ((rows >= y1[:, None]) & (rows <= y2[:, None]) &
              (cols >= x1[:, None]) & (cols <= x2[:, None]))              # (P, HW)

    # Effective crop extents: Python slicing clips the high index at H-1/W-1.
    y_hi = jnp.minimum(y2, H - 1)
    x_hi = jnp.minimum(x2, W - 1)
    count = ((y_hi - jnp.maximum(y1, 0) + 1) *
             (x_hi - jnp.maximum(x1, 0) + 1))
    # Clamp so a degenerate box (all-zero mask column) cannot produce Inf
    # weights that would poison the shared matmul.
    count = jnp.maximum(count, 1).astype(jnp.float32) * jnp.float32(C)
    # Lane-dense (P, HW) mask with the mean scaling 1/(C*h*w) baked in: the
    # kernel just accumulates unscaled per-C-block matmuls.
    mask = inside.astype(jnp.float32) / count[:, None]                    # (P, HW)

    feat_flat = feature.reshape(N, C, HW)   # lane-dense: H*W on lanes

    # ---- tiling / VMEM budget ----
    n_hw = _choose_hw_split(HW)
    hw_blk = HW // n_hw
    itemsize = feature.dtype.itemsize

    # 48 MiB scoped VMEM: raises v5e's 16 MiB / v6e-v7x's 32 MiB defaults while
    # staying safely under v7x's 64 MiB physical per-TC VMEM.
    vmem_limit = 48 << 20
    mask_bytes = 2 * (((P + 7) // 8) * 8) * hw_blk * 4          # double-buffered mask
    out_bytes = (((N + 7) // 8) * 8) * (((P + 127) // 128) * 128) * 4
    per_buffer_budget = max(
        (vmem_limit - mask_bytes - out_bytes - (2 << 20)) // 3, 1 << 20)
    c_blk = _choose_c_block(N, C, hw_blk, itemsize, per_buffer_budget)
    n_c = C // c_blk

    out_parts = pl.pallas_call(
        _selector_kernel,
        out_shape=jax.ShapeDtypeStruct((n_hw, N, P), jnp.float32),
        grid=(n_hw, n_c),
        in_specs=[
            pl.BlockSpec((P, hw_blk), lambda j, c: (0, j)),
            pl.BlockSpec((N, c_blk, hw_blk), lambda j, c: (0, c, j)),
        ],
        out_specs=pl.BlockSpec((None, N, P), lambda j, c: (j, 0, 0)),
        compiler_params=pltpu.CompilerParams(
            dimension_semantics=("parallel", "arbitrary"),   # C is the reduction axis
            vmem_limit_bytes=vmem_limit,
        ),
    )(mask, feat_flat)

    out = out_parts.sum(axis=0)                                           # (N, P)
    # torch.cat over proposals of (N,1,1,1) tensors -> proposal-major (P*N,1,1,1)
    return out.T.reshape(P * N, 1, 1, 1)


def _reference(feature, bbox, scale_ratio):
    feature = np.asarray(feature)
    bbox = np.asarray(bbox)
    scale_ratio = np.asarray(scale_ratio)
    outs = []
    for i in range(bbox.shape[0]):
        x1 = int(np.floor(bbox[i, 0] / scale_ratio[1]))
        x2 = int(np.floor(bbox[i, 2] / scale_ratio[1]))
        y1 = int(np.floor(bbox[i, 1] / scale_ratio[0]))
        y2 = int(np.floor(bbox[i, 3] / scale_ratio[0]))
        region = feature[:, :, y1:y2 + 1, x1:x2 + 1]   # (N, C, h, w)
        outs.append(region.mean(axis=(1, 2, 3)))        # (N,)
    return np.concatenate(outs).reshape(-1, 1, 1, 1)


if __name__ == "__main__":
    key = jax.random.PRNGKey(0)
    k_feat, _ = jax.random.split(key)

    # N=2 batch, C=4 channels, 16x16 feature map
    feature = jax.random.normal(k_feat, (2, 4, 16, 16), dtype=jnp.float32)

    # proposals in input-image coordinates (scale 2 => feature-map coords up to 15)
    bbox = jnp.array(
        [
            [0.0, 0.0, 31.0, 31.0],
            [4.0, 6.0, 20.0, 22.0],
            [10.0, 2.0, 30.0, 14.0],
        ],
        dtype=jnp.float32,
    )
    scale_ratio = jnp.array([2.0, 2.0], dtype=jnp.float32)  # (y_scale, x_scale)

    out = selector_forward(feature, bbox, scale_ratio)
    out = jax.block_until_ready(out)

    ref = _reference(feature, bbox, scale_ratio)
    np.testing.assert_allclose(np.asarray(out), ref, rtol=1e-5, atol=1e-5)

    print("KERNEL_OK")
</pallas_src>

<mosaic_0001>
module attributes {stable_mosaic.version = 11 : i64} {
  func.func @_selector_kernel(%arg0: i32, %arg1: i32, %arg2: memref<3x128xf32, #tpu.memory_space<vmem>>, %arg3: memref<2x4x128xf32, #tpu.memory_space<vmem>>, %arg4: memref<1x2x3xf32, #tpu.memory_space<vmem>>) attributes {dimension_semantics = [#tpu.dimension_semantics<parallel>, #tpu.dimension_semantics<arbitrary>], iteration_bounds = array<i64: 2, 1>, scalar_prefetch = 0 : i64, scratch_operands = 0 : i64, tpu.core_type = #tpu.core_type<tc>, window_params = [{transform_indices = @transform_0, window_bounds = array<i64: 3, 128>}, {transform_indices = @transform_1, window_bounds = array<i64: 2, 4, 128>}, {transform_indices = @transform_2, window_bounds = array<i64: 1, 2, 3>}]} {
    %c0_i32 = arith.constant 0 : i32
    %0 = arith.cmpi eq, %arg1, %c0_i32 : i32
    %1 = arith.extui %0 : i1 to i32
    %c0_i32_0 = arith.constant 0 : i32
    %2 = arith.cmpi ne, %1, %c0_i32_0 : i32
    scf.if %2 {
      %cst_12 = arith.constant 0.000000e+00 : f32
      %13 = vector.broadcast %cst_12 : f32 to vector<2x3xf32>
      %c0_13 = arith.constant 0 : index
      %c0_14 = arith.constant 0 : index
      %c0_15 = arith.constant 0 : index
      %14 = vector.load %arg4[%c0_13, %c0_14, %c0_15] : memref<1x2x3xf32, #tpu.memory_space<vmem>>, vector<1x2x3xf32>
      %15 = vector.shape_cast %14 : vector<1x2x3xf32> to vector<2x3xf32>
      %16 = vector.shape_cast %13 : vector<2x3xf32> to vector<1x2x3xf32>
      tpu.vector_store %arg4[%c0_13, %c0_14, %c0_15], %16 {strides = array<i32>} : memref<1x2x3xf32, #tpu.memory_space<vmem>>, vector<1x2x3xf32>,
    } else {
    }
    %c0 = arith.constant 0 : index
    %c0_1 = arith.constant 0 : index
    %c0_2 = arith.constant 0 : index
    %3 = vector.load %arg3[%c0, %c0_1, %c0_2] : memref<2x4x128xf32, #tpu.memory_space<vmem>>, vector<2x4x128xf32>
    %cst = arith.constant dense<0.000000e+00> : vector<2x128xf32>
    %4 = vector.multi_reduction <add>, %3, %cst [1] : vector<2x4x128xf32> to vector<2x128xf32>
    %c0_3 = arith.constant 0 : index
    %c0_4 = arith.constant 0 : index
    %5 = vector.load %arg2[%c0_3, %c0_4] : memref<3x128xf32, #tpu.memory_space<vmem>>, vector<3x128xf32>
    %cst_5 = arith.constant dense<0.000000e+00> : vector<2x3xf32>
    %6 = tpu.matmul %4, %5, %cst_5 {dimension_numbers = #tpu.dot_dimension_numbers<[1], [1], [0], [0], [0, 0, 1, 0], [], []>} : vector<2x128xf32>, vector<3x128xf32>, vector<2x3xf32> -> vector<2x3xf32>
    %c0_6 = arith.constant 0 : index
    %c0_7 = arith.constant 0 : index
    %c0_8 = arith.constant 0 : index
    %7 = vector.load %arg4[%c0_6, %c0_7, %c0_8] : memref<1x2x3xf32, #tpu.memory_space<vmem>>, vector<1x2x3xf32>
    %8 = vector.shape_cast %7 : vector<1x2x3xf32> to vector<2x3xf32>
    %9 = arith.addf %8, %6 : vector<2x3xf32>
    %c0_9 = arith.constant 0 : index
    %c0_10 = arith.constant 0 : index
    %c0_11 = arith.constant 0 : index
    %10 = vector.load %arg4[%c0_9, %c0_10, %c0_11] : memref<1x2x3xf32, #tpu.memory_space<vmem>>, vector<1x2x3xf32>
    %11 = vector.shape_cast %10 : vector<1x2x3xf32> to vector<2x3xf32>
    %12 = vector.shape_cast %9 : vector<2x3xf32> to vector<1x2x3xf32>
    tpu.vector_store %arg4[%c0_9, %c0_10, %c0_11], %12 {strides = array<i32>} : memref<1x2x3xf32, #tpu.memory_space<vmem>>, vector<1x2x3xf32>,
    return
  }
  func.func @transform_0(%arg0: i32, %arg1: i32) -> (i32, i32) {
    %c0_i32 = arith.constant 0 : i32
    %c0_i32_0 = arith.constant 0 : i32
    return %c0_i32, %arg0 : i32, i32
  }
  func.func @transform_1(%arg0: i32, %arg1: i32) -> (i32, i32, i32) {
    %c0_i32 = arith.constant 0 : i32
    %c0_i32_0 = arith.constant 0 : i32
    return %c0_i32, %arg1, %arg0 : i32, i32, i32
  }
  func.func @transform_2(%arg0: i32, %arg1: i32) -> (i32, i32, i32) {
    %c0_i32 = arith.constant 0 : i32
    %c0_i32_0 = arith.constant 0 : i32
    %c0_i32_1 = arith.constant 0 : i32
    return %arg0, %c0_i32, %c0_i32_0 : i32, i32, i32
  }
}

</mosaic_0001>

<bundles_post_ra>
// kernel: tpu_custom_call.1
= control target key start
LH: loop header
LB: loop body
LE: loop exit
PB: predicated region body
PF: predicated region fallthrough
CT: control target
= control target key end

     0   :  { %7 = vsyncpa [#allocation3], 0  ;;  %s933_s0 = inlined_call_operand.hbm [shape: f32[3,256], index: 0, kind: input, shape index: {}]   ;;  %s934_s1 = inlined_call_operand.hbm [shape: f32[2,4,256], index: 1, kind: input, shape index: {}]   ;;  %s935_s2 = inlined_call_operand.hbm [shape: f32[2,2,3], index: 2, kind: output, shape index: {}]  }
   0x1   :  { %9 = vsyncpa [#allocation3 + $0x1], 0 }
   0x2   :  { %10 = vsyncpa [#allocation6], 0 }
   0x3   :  { %12 = vsyncpa [#allocation6 + $0x1], 0 }
   0x4   :  { %13 = vsyncpa [#allocation4], 0 }
   0x5   :  { %15 = vsyncpa [#allocation4 + $0x1], 0  ;;  %s700_s9 = smov 0   ;;  %s702_s10 = smov 0  }
   0x6   :  { %s704_s11 = smov 0   ;;  %s706_s12 = smov 0  }
   0x7   :  { %s708_s13 = smov 0   ;;  %s710_s14 = smov 0  }
   0x8 LB: > { %s434_s15 = sadd.s32 4294967295, %s675_s14   ;;  %s435_s16 = sadd.s32 4294967294, %s675_s14   ;;  %s675_s14 = sphi %s710_s14, %s21_s14   ;;  %s671_s13 = sphi %s708_s13, %s952_s13   ;;  %s667_s12 = sphi %s706_s12, %s951_s12   ;;  %s663_s11 = sphi %s704_s11, %s950_s11   ;;  %s659_s10 = sphi %s702_s10, %s949_s10   ;;  %s655_s9 = sphi %s700_s9, %s948_s9  }
   0x9   : > { %s33_s17 = sadd.s32 1, %s671_s13  ;;  %s40_s18 = sadd.s32 1, %s663_s11 }
   0xa   : > { %p35_p0 = scmp.ge.s32.totalorder %s33_s17, 2  ;;  %p47_p1 = scmp.ne.s32.totalorder %s663_s11, %s659_s10 }
   0xb   : > { %p48_p2 = scmp.eq.s32.totalorder %s675_s14, 0  ;;  %p53_p3 = scmp.ne.s32.totalorder %s659_s10, %s655_s9 }
   0xc   : > { %s954_s17 = smov (%p35_p0, %s33_s17), 0  ;;  %p54_p5 = scmp.eq.s32.totalorder %s434_s15, 0 }
   0xd   : > { %p741_p4 = por %p48_p2, %p47_p1  ;;  %s37_s20 = ssub.s32 %s671_s13, %s954_s17 }
   0xe   : > { %p105_p6 = scmp.eq.s32.totalorder %s434_s15, 1  ;;  %p38_p7 = scmp.eq.s32.totalorder %s37_s20, 0 }
   0xf   : > { %p747_p8 = por %p54_p5, %p53_p3  ;;  %p111_p10 = scmp.eq.s32.totalorder %s435_s16, 1 }
  0x10   : > { %p751_p9 = por %p105_p6, %p47_p1  ;;  %p474_p13 = scmp.lt.s32.totalorder %s675_s14, 2 }
  0x11   : > { %s939_s21 = scalar_select %p747_p8, 1, 0 }
  0x12   : > { %s940_s22 = scalar_select %p751_p9, 1, 0 }
  0x13   : > { %s756_s23 = scalar_select %p38_p7, %s663_s11, %s40_s18  }
  0x14   : > { %p758_p11 = por %p111_p10, %p53_p3  ;;  %s765_s25 = sand.u32 1, %s663_s11  }
  0x15   : > { %s438_s26 = sshll.u32 %s765_s25, 2  ;;  %s439_s27 = sshll.u32 %s671_s13, 6 }
  0x16   : > { %s941_s24 = scalar_select %p758_p11, 1, 0 }
  0x17   : > { %s774_s30 = scalar_lea.hbm %s933_s0, %s439_s27  ;;  %s135_s3 = scalar_lea.vmem [#allocation2], %s438_s26 }
  0x18   : > { %s142_s4 = sshll.u32 %s135_s3, 4  ;;  %p780_p0 = pnand %p474_p13, %p741_p4  ;;  %s776_s4 = int_to_ptr.vmem [resolvable:$true] %s142_s4 }
  0x19   : > { %s440_s6 = sshll.u32 %s765_s25, 3  ;;  %s132_s7 = scalar_lea.sflag [#allocation3], %s765_s25 }
  0x1a   : > { %s529_s8 = scalar_lea.hbm %s774_s30, 64  ;;  %p531_p2 = pneg %p780_p0 }
  0x1b   : > { %p530_p1 = scmp.ne.s32.totalorder %s774_s30, %s529_s8  ;;  %s534_s18 = scalar_lea.hbm %s933_s0, 128 }
  0x1c   : > { %p535_p4 = scmp.lt.u32.totalorder %s774_s30, %s933_s0  ;;  %p536_p6 = scmp.lt.u32.totalorder %s534_s18, %s529_s8 }
  0x1d   : > { %p532_p3 = pnand %p531_p2, %p530_p1  ;;  %p538_p10 = scmp.lt.u32.totalorder %s529_s8, %s774_s30 }
  0x1e   : > { %p537_p7 = por %p536_p6, %p535_p4 }
  0x1f   : > { %p533_p5 = pneg %p532_p3 }
  0x20   : > { %p539_p13 = por %p538_p10, %p537_p7 }
  0x22   : > { %p540_p12 = pnand %p539_p13, %p533_p5 }
  0x24   : > { %543 = shalt.err (!%p540_p12)
}
  0x25   : > { %s544_s26 = scalar_lea.vmem %s776_s4, 64  ;;  %s677_s28 = smov [#allocation2]  }
  0x26   : > { %p545_p1 = scmp.ne.s32.totalorder %s776_s4, %s544_s26  ;;  %s549_s29 = sshll.u32 %s677_s28, 4  ;;  %s550_s29 = int_to_ptr.vmem [resolvable:$false] %s549_s29 }
  0x27   : > { %s551_s3 = scalar_lea.vmem %s550_s29, 128  ;;  %p552_p9 = scmp.lt.s32.totalorder %s776_s4, %s550_s29 }
  0x28   : > { %p547_p3 = pnand %p545_p1, %p531_p2  ;;  %p553_p4 = scmp.lt.s32.totalorder %s551_s3, %s544_s26 }
  0x2a   : > { %p548_p11 = pneg %p547_p3  ;;  %p554_p6 = por %p553_p4, %p552_p9 }
  0x2c   : > { %p555_p7 = pnand %p554_p6, %p548_p11 }
  0x2e   : > { %558 = shalt.err (!%p555_p7)
}
  0x2f   : > { %466 = dma.hbm_to_vmem [thread:$0]  (!%p780_p0), %s774_s30, 64, %s776_s4, %s132_s7  }
  0x30   : > { %s816_s16 = scalar_lea.hbm %s934_s1, %s439_s27  ;;  %p442_p9 = scmp.ge.s32.totalorder %s675_s14, 1 }
  0x31   : > { %p169_p11 = scmp.lt.s32.totalorder %s675_s14, 3  ;;  %s153_s18 = scalar_lea.vmem [#allocation5], %s440_s6 }
  0x32   : > { %s161_s19 = sshll.u32 %s153_s18, 4  ;;  %s150_s30 = scalar_lea.sflag [#allocation6], %s765_s25  ;;  %s822_s19 = int_to_ptr.vmem [resolvable:$true] %s161_s19 }
  0x33   : > { %p824_p12 = pnand %p442_p9, %p169_p11  ;;  %s559_s4 = scalar_lea.hbm %s816_s16, 128 }
  0x34   : > { %p560_p5 = scmp.ne.s32.totalorder %s816_s16, %s559_s4  ;;  %s564_s26 = scalar_lea.hbm %s934_s1, 256 }
  0x35   : > { %p565_p1 = scmp.lt.u32.totalorder %s816_s16, %s934_s1  ;;  %p566_p3 = scmp.lt.u32.totalorder %s564_s26, %s559_s4 }
  0x36   : > { %p562_p10 = pnand %p560_p5, %p531_p2  ;;  %p568_p6 = scmp.lt.u32.totalorder %s559_s4, %s816_s16 }
  0x37   : > { %p567_p4 = por %p566_p3, %p565_p1 }
  0x38   : > { %p563_p13 = pneg %p562_p10 }
  0x39   : > { %p569_p7 = por %p568_p6, %p567_p4 }
  0x3b   : > { %p570_p9 = pnand %p569_p7, %p563_p13 }
  0x3d   : > { %573 = shalt.err (!%p570_p9)
}
  0x3e   : > { %s574_s29 = scalar_lea.vmem %s822_s19, 128  ;;  %s678_s3 = smov [#allocation5]  }
  0x3f   : > { %p575_p11 = scmp.ne.s32.totalorder %s822_s19, %s574_s29  ;;  %s579_s8 = sshll.u32 %s678_s3, 4  ;;  %s580_s8 = int_to_ptr.vmem [resolvable:$false] %s579_s8 }
  0x40   : > { %s581_s15 = scalar_lea.vmem %s580_s8, 256  ;;  %p582_p8 = scmp.lt.s32.totalorder %s822_s19, %s580_s8 }
  0x41   : > { %p577_p5 = pnand %p575_p11, %p531_p2  ;;  %p583_p1 = scmp.lt.s32.totalorder %s581_s15, %s574_s29 }
  0x43   : > { %p578_p10 = pneg %p577_p5  ;;  %p584_p3 = por %p583_p1, %p582_p8 }
  0x45   : > { %p585_p4 = pnand %p584_p3, %p578_p10 }
  0x47   : > { %588 = shalt.err (!%p585_p4)
}
  0x48   : > { %s679_s18 = smov 128   ;;  %s680_s4 = smov 64  }
  0x49   : > { %s681_s27 = smov 4   ;;  %173 = sbr.rel (%p824_p12) target bundleno = 329 (0x149), region = 28 }
  0x4a   : > { %469 = dma.hbm_to_vmem [thread:$0]  (!%p780_p0), %s816_s16, 128, %s822_s19, %s150_s30, %s679_s18, %s680_s4, %s681_s27  }
  0x4b   : > { %s857_s7 = sand.u32 (!%p824_p12), 1, %s659_s10   ;;  %p944_p8 = scmp.ne.s32.totalorder (!%p824_p12), %s939_s21, 0 }
  0x4c   : > { %s443_s26 = sshll.u32 (!%p824_p12), %s857_s7, 2  ;;  %s176_s28 = scalar_lea.sflag (!%p824_p12), [#allocation3], %s857_s7 }
  0x4d   : > { %s179_s6 = scalar_lea.vmem (!%p824_p12), [#allocation2], %s443_s26 }
  0x50   : > { %642 = dma.done.wait (%p944_p8), %s176_s28, 64  }
  0x51   : > { %644 = vsyncadd (%p944_p8), %s176_s28, 4294967232  ;;  %s444_s25 = sshll.u32 %s857_s7, 3  ;;  %s185_s5 = scalar_lea.sflag [#allocation6], %s857_s7 }
  0x52   : > { %s188_s16 = scalar_lea.vmem [#allocation5], %s444_s25 }
  0x53   : > { %646 = dma.done.wait (%p944_p8), %s185_s5, 128  }
  0x54   : > { %648 = vsyncadd (%p944_p8), %s185_s5, 4294967168  ;;  %s445_s19 = sshll.u32 %s857_s7, 1  ;;  %v682_v0 = vmov 0.0   ;;  %vm683_vm0 = vmmov 0   ;;  %vm218_vm1 = vcmask 17408   ;;  %vm222_vm2 = vcmask 1043456  }
  0x55   : > { %452 = vmatprep.subr.mxu0 %v682_v0  ;;  %454 = vmatprep.mubr.msk.f32.mxu0 %vm683_vm0, %v682_v0  ;;  %s872_s20 = scalar_lea.vmem [#allocation7], %s445_s19  ;;  %v237_v1 = vld [vmem:[%s179_s6] sm:$0x7]  ;;  %v220_v2 = vld [vmem:[%s188_s16] sm:$0xf]  ;;  %vm240_vm3 = vcmask 1041409  }
  0x56   : > { %219 = vst.msk [vmem:[%s872_s20] sm:$0x3] %vm218_vm1, %v682_v0  ;;  %v221_v3 = vld [vmem:[%s188_s16 + $0x4] sm:$0xf]  ;;  %453 = vmatpush3.xpose.msra.mxu0 %v237_v1  ;;  %v223_v4 = vsel %vm222_vm2, %v220_v2, 0.0  ;;  %s447_s21 = sshll.u32 %s667_s12, 5 }
  0x57   : > { %v230_v5 = vsel %vm222_vm2, %v221_v3, 0.0  ;;  %v224_v6 = vrot.slane %v223_v4, 4  ;;  %s331_s30 = sshll.u32 %s872_s20, 4  ;;  %s882_s8 = scalar_lea.hbm %s935_s2, %s447_s21  ;;  %s884_s30 = int_to_ptr.vmem [resolvable:$true] %s331_s30 }
  0x58   : > { %v231_v7 = vrot.slane %v230_v5, 4  ;;  %s318_s15 = scalar_lea.sflag [#allocation4], %s857_s7  ;;  %s589_s18 = scalar_lea.vmem %s884_s30, 32 }
  0x59   : > { %v225_v8 = vadd.f32 %v224_v6, %v223_v4  ;;  %p590_p0 = scmp.ne.s32.totalorder %s884_s30, %s589_s18  ;;  %p945_p2 = scmp.ne.s32.totalorder %s940_s22, 0 }
  0x5a   : > { %v232_v9 = vadd.f32 %v231_v7, %v230_v5  ;;  %s684_s12 = smov [#allocation7]  }
  0x5b   : > { %v226_v10 = vrot.slane %v225_v8, 2  ;;  %p591_p12 = pnand %p590_p0, %p945_p2  ;;  %s593_s4 = sshll.u32 %s684_s12, 4  ;;  %s594_s4 = int_to_ptr.vmem [resolvable:$false] %s593_s4 }
  0x5c   : > { %v233_v11 = vrot.slane %v232_v9, 2  ;;  %s595_s27 = scalar_lea.vmem %s594_s4, 64  ;;  %p596_p6 = scmp.lt.s32.totalorder %s884_s30, %s594_s4 }
  0x5d   : > { %v227_v12 = vadd.f32 %v226_v10, %v225_v8  ;;  %v313_v19 = vld [vmem:[%s872_s20] sm:$0x3]  ;;  %p592_p13 = pneg %p591_p12  ;;  %p597_p7 = scmp.lt.s32.totalorder %s595_s27, %s589_s18 }
  0x5e   : > { %v234_v13 = vadd.f32 %v233_v11, %v232_v9 }
  0x5f   : > { %v228_v14 = vrot.slane %v227_v12, 1  ;;  %p598_p9 = por %p597_p7, %p596_p6 }
  0x60   : > { %v235_v15 = vrot.slane %v234_v13, 1 }
  0x61   : > { %v229_v16 = vadd.f32 %v228_v14, %v227_v12  ;;  %p599_p11 = pnand %p598_p9, %p592_p13 }
  0x62   : > { %v236_v17 = vadd.f32 %v235_v15, %v234_v13 }
  0x64   : > { %v241_v18 = vsel %vm240_vm3, %v236_v17, %v229_v16 }
  0x65   : > { %455 = vmatmul.mubr.f32.vlgmr.msra.gmra.mrb[0].mxu0 %v241_v18 }
 0x138   : > { %v309_v20 = vpop.f32.mrb[0].mxu0 }
 0x139   : > { %v314_v21 = vadd.f32 %v313_v19, %v309_v20  ;;  %v456_v22 = vpop.f32.mrb[1].mxu0 }
 0x13b   : > { %316 = vst.msk [vmem:[%s872_s20] sm:$0x3] %vm218_vm1, %v314_v21 }
 0x13c   : > { %602 = shalt.err (!%p599_p11)
}
 0x13d   : > { %s603_s7 = scalar_lea.hbm %s882_s8, 32  ;;  %s607_s6 = scalar_lea.hbm %s935_s2, 64 }
 0x13e   : > { %p604_p5 = scmp.ne.s32.totalorder %s882_s8, %s603_s7  ;;  %p608_p3 = scmp.lt.u32.totalorder %s882_s8, %s935_s2 }
 0x13f   : > { %p609_p4 = scmp.lt.u32.totalorder %s607_s6, %s603_s7  ;;  %p611_p0 = scmp.lt.u32.totalorder %s603_s7, %s882_s8 }
 0x140   : > { %p605_p10 = pnand %p604_p5, %p945_p2 }
 0x141   : > { %p610_p8 = por %p609_p4, %p608_p3 }
 0x142   : > { %p606_p1 = pneg %p605_p10 }
 0x143   : > { %p612_p12 = por %p611_p0, %p610_p8 }
 0x145   : > { %p613_p13 = pnand %p612_p12, %p606_p1 }
 0x147   : > { %616 = shalt.err (!%p613_p13)
}
 0x148   : > { %461 = dma.vmem_to_hbm [thread:$0]  (%p945_p2), %s884_s30, 32, %s882_s8, %s318_s15  }
 0x149 PF: > { %s343_s16 = sand.u32 1, %s655_s9   ;;  %p946_p6 = scmp.ne.s32.totalorder %s941_s24, 0 }
 0x14a   : > { %p947_p7 = scmp.ge.s32.totalorder %s675_s14, 2  ;;  %s344_s19 = scalar_lea.sflag [#allocation4], %s343_s16 }
 0x14c   : > { %p471_p9 = pnand %p947_p7, %p946_p6 }
 0x14e   : > { %650 = dma.done.wait (!%p471_p9), %s344_s19, 32  }
 0x14f   : > { %652 = vsyncadd (!%p471_p9), %s344_s19, 4294967264  ;;  %s21_s14 = sadd.s32 1, %s675_s14   ;;  %s948_s9 = smov %s659_s10 }
 0x150   : > { %p18_p11 = scmp.ge.s32.totalorder %s21_s14, 4   ;;  %s949_s10 = smov %s663_s11 }
 0x151   : > { %s950_s11 = smov %s756_s23  ;;  %s951_s12 = smov %s671_s13 }
 0x152   : > { %s952_s13 = smov %s954_s17  ;;  %20 = sbr.rel (!%p18_p11) target bundleno = 8 (0x8), region = 90 }
 0x159   :  { %349 = vsyncpa [#allocation3], 1 }
 0x15a   :  { %351 = vsyncpa [#allocation3 + $0x1], 1 }
 0x15b   :  { %352 = vsyncpa [#allocation6], 1 }
 0x15c   :  { %354 = vsyncpa [#allocation6 + $0x1], 1 }
 0x15d   :  { %355 = vsyncpa [#allocation4], 1 }
 0x15e   :  { %357 = vsyncpa [#allocation4 + $0x1], 1 }

</bundles_post_ra>
